<compile_context>
chip_gen: v6e
topology: v6e:2x2x1
jax: 0.10.0
libtpu: 0.0.40
codegen_flags: <defaults>
</compile_context>

<pallas_src>
import functools

import jax
import jax.numpy as jnp
from jax.experimental import pallas as pl
from jax.experimental.pallas import tpu as pltpu

EPS = 1e-5
MAX_ROWS = 1024                  # row tile for the matmul M dimension
VMEM_LIMIT = 32 * 1024 * 1024    # >= scoped-VMEM default on v5e/v6e/v7x


def _round_up(x, m):
    return (x + m - 1) // m * m


# ----------------------------------------------------------------------------
# Fused conv kernel:  out = [relu]( sum_k X_k @ W_k + shift [+ residual] )
# grid = (N, T_out, row_blocks, K_taps); tap axis innermost / "arbitrary",
# accumulating into a fp32 VMEM scratch.
# ----------------------------------------------------------------------------
def _make_conv_kernel(relu, has_res):
    def kernel(*refs):
        if has_res:
            x_ref, w_ref, b_ref, r_ref, o_ref, acc_ref = refs
        else:
            x_ref, w_ref, b_ref, o_ref, acc_ref = refs
        k = pl.program_id(3)

        @pl.when(k == 0)
        def _init():
            acc_ref[...] = jnp.zeros_like(acc_ref)

        acc_ref[...] += jnp.dot(x_ref[...], w_ref[...],
                                preferred_element_type=jnp.float32)

        @pl.when(k == pl.num_programs(3) - 1)
        def _finish():
            y = acc_ref[...] + b_ref[...]
            if has_res:
                y = y + r_ref[...].astype(jnp.float32)
            if relu:
                y = jnp.maximum(y, 0.0)
            o_ref[...] = y.astype(o_ref.dtype)

    return kernel


def _tap_conv(xp, wt, shift, res, *, t_out, t_stride, relu):
    """xp: (N, Tp, R, K) bf16, wt: (KT, K, Cout) bf16, shift: (Cout,) f32,
    res: optional (N, t_out, R, Cout) bf16.  Returns (N, t_out, R, Cout) bf16."""
    n, _, r, kdim = xp.shape
    kt, _, cout = wt.shape

    if r <= MAX_ROWS:
        rb, rp = r, r
    else:
        rb = MAX_ROWS
        rp = _round_up(r, rb)
        if rp != r:
            xp = jnp.pad(xp, ((0, 0), (0, 0), (0, rp - r), (0, 0)))
            if res is not None:
                res = jnp.pad(res, ((0, 0), (0, 0), (0, rp - r), (0, 0)))

    grid = (n, t_out, rp // rb, kt)

    in_specs = [
        pl.BlockSpec((None, None, rb, kdim),
                     lambda i, j, b, k: (i, j * t_stride + k, b, 0)),
        pl.BlockSpec((None, kdim, cout), lambda i, j, b, k: (k, 0, 0)),
        pl.BlockSpec((1, cout), lambda i, j, b, k: (0, 0)),
    ]
    args = [xp, wt, shift.reshape(1, cout)]
    if res is not None:
        in_specs.append(pl.BlockSpec((None, None, rb, cout),
                                     lambda i, j, b, k: (i, j, b, 0)))
        args.append(res)

    steps = n * t_out * (rp // rb) * kt
    flops = 2 * steps * rb * kdim * cout
    bytes_accessed = (steps * (rb * kdim + kdim * cout) * 2
                      + n * t_out * rp * cout * 2 * (2 if res is not None else 1))

    out = pl.pallas_call(
        _make_conv_kernel(relu, res is not None),
        grid=grid,
        in_specs=in_specs,
        out_specs=pl.BlockSpec((None, None, rb, cout),
                               lambda i, j, b, k: (i, j, b, 0)),
        out_shape=jax.ShapeDtypeStruct((n, t_out, rp, cout), jnp.bfloat16),
        scratch_shapes=[pltpu.VMEM((rb, cout), jnp.float32)],
        compiler_params=pltpu.CompilerParams(
            dimension_semantics=("parallel", "parallel", "parallel", "arbitrary"),
            vmem_limit_bytes=VMEM_LIMIT),
        cost_estimate=pl.CostEstimate(flops=flops, transcendentals=0,
                                      bytes_accessed=bytes_accessed),
    )(*args)
    if rp != r:
        out = out[:, :, :r]
    return out


# ----------------------------------------------------------------------------
# Other Pallas kernels (pool / head)
# ----------------------------------------------------------------------------
def _window_max_kernel(*refs):
    o_ref = refs[-1]
    acc = refs[0][...]
    for r in refs[1:-1]:
        acc = jnp.maximum(acc, r[...])
    o_ref[...] = acc


@jax.jit
def max_pool_1x3x3(x):
    """nn.MaxPool3d(kernel=[1,3,3], stride=[1,2,2], padding=[0,1,1]) on NTHWC."""
    # TODO(synk): the 9 shifted windows are still materialized (bf16); an
    # in-kernel halo read would remove that remaining HBM traffic.
    n, t, h, w, c = x.shape
    ho = (h + 2 - 3) // 2 + 1
    wo = (w + 2 - 3) // 2 + 1
    xp = jnp.pad(x, ((0, 0), (0, 0), (1, 1), (1, 1), (0, 0)),
                 constant_values=-jnp.inf)
    windows = [
        xp[:, :, ih::2, iw::2, :][:, :, :ho, :wo, :].reshape(n * t * ho * wo, c)
        for ih in range(3) for iw in range(3)
    ]
    m = n * t * ho * wo
    if m <= MAX_ROWS:
        tm, mp = m, m
    else:
        tm = MAX_ROWS
        mp = _round_up(m, tm)
        if mp != m:
            windows = [jnp.pad(wi, ((0, mp - m), (0, 0))) for wi in windows]
    out = pl.pallas_call(
        _window_max_kernel,
        grid=(mp // tm,),
        in_specs=[pl.BlockSpec((tm, c), lambda i: (i, 0)) for _ in windows],
        out_specs=pl.BlockSpec((tm, c), lambda i: (i, 0)),
        out_shape=jax.ShapeDtypeStruct((mp, c), x.dtype),
        compiler_params=pltpu.CompilerParams(
            dimension_semantics=("parallel",), vmem_limit_bytes=VMEM_LIMIT),
    )(*windows)
    return out[:m].reshape(n, t, ho, wo, c)


def _global_avg_kernel(x_ref, o_ref):
    inv = 1.0 / x_ref.shape[1]
    o_ref[...] = jnp.sum(x_ref[...].astype(jnp.float32), axis=1) * inv


@jax.jit
def global_avg_pool(x):
    n, t, h, w, c = x.shape
    x2 = x.reshape(n, t * h * w, c)
    return pl.pallas_call(
        _global_avg_kernel,
        in_specs=[pl.BlockSpec(memory_space=pltpu.MemorySpace.VMEM)],
        out_specs=pl.BlockSpec(memory_space=pltpu.MemorySpace.VMEM),
        out_shape=jax.ShapeDtypeStruct((n, c), jnp.float32),
    )(x2)


def _linear_softmax_kernel(x_ref, w_ref, b_ref, o_ref):
    y = jnp.dot(x_ref[...], w_ref[...], preferred_element_type=jnp.float32)
    y = y + b_ref[...]
    y = y - jnp.max(y, axis=-1, keepdims=True)
    e = jnp.exp(y)
    o_ref[...] = e / jnp.sum(e, axis=-1, keepdims=True)


@jax.jit
def linear_softmax(x, w, b):
    n = x.shape[0]
    k = w.shape[1]
    return pl.pallas_call(
        _linear_softmax_kernel,
        in_specs=[pl.BlockSpec(memory_space=pltpu.MemorySpace.VMEM)] * 3,
        out_specs=pl.BlockSpec(memory_space=pltpu.MemorySpace.VMEM),
        out_shape=jax.ShapeDtypeStruct((n, k), jnp.float32),
    )(x, w, b.reshape(1, k))


# ----------------------------------------------------------------------------
# Conv + BN wrappers (weights folded, bf16 streams)
# ----------------------------------------------------------------------------
def _bn_fold(p):
    scale = p["gamma"] * jax.lax.rsqrt(p["rvar"] + EPS)
    shift = p["beta"] - p["rmean"] * scale
    return scale, shift


@functools.partial(jax.jit, static_argnames=("temp_k", "temp_stride",
                                             "spatial_stride", "relu"))
def conv_pointwise_bn(x, p, residual=None, *, temp_k=1, temp_stride=1,
                      spatial_stride=1, relu=True):
    """Conv3d(kernel=(temp_k,1,1), stride=(temp_stride,s,s),
    padding=(temp_k//2,0,0), bias=False) + BN(eval) [+ residual] [+ ReLU].
    Temporal taps are accumulated inside the Pallas kernel (no im2col)."""
    w = p["w"]                                        # (Cout, Cin, kt, 1, 1)
    cout, cin = w.shape[0], w.shape[1]
    scale, shift = _bn_fold(p)
    wt = (jnp.transpose(w[:, :, :, 0, 0], (2, 1, 0)) * scale).astype(jnp.bfloat16)

    if spatial_stride > 1:                            # 1x1 conv + spatial stride
        x = x[:, :, ::spatial_stride, ::spatial_stride, :]
    n, t, h, wd, _ = x.shape
    pt = temp_k // 2
    t_out = (t + 2 * pt - temp_k) // temp_stride + 1

    if temp_k == 1 and temp_stride == 1:
        # Plain fused matmul over all rows (biggest possible row blocks).
        m = n * t * h * wd
        xp = x.reshape(1, 1, m, cin)
        res = None if residual is None else residual.reshape(1, 1, m, cout)
        y = _tap_conv(xp, wt, shift, res, t_out=1, t_stride=1, relu=relu)
        return y.reshape(n, t, h, wd, cout)

    assert residual is None
    xp = jnp.pad(x, ((0, 0), (pt, pt), (0, 0), (0, 0), (0, 0)))
    xp = xp.reshape(n, t + 2 * pt, h * wd, cin)
    y = _tap_conv(xp, wt, shift, None, t_out=t_out, t_stride=temp_stride,
                  relu=relu)
    return y.reshape(n, t_out, h, wd, cout)


@functools.partial(jax.jit, static_argnames=("stride", "padding", "relu"))
def conv_spatial_bn(x, p, *, stride, padding, relu=True):
    """Conv3d((kt,kh,kw)) + BN(eval) [+ ReLU] for spatial kernels (stems and the
    1x3x3 bottleneck-b convs).  Spatial taps use a bf16 im2col; temporal taps
    are accumulated inside the kernel."""
    # TODO(synk): the kh*kw spatial taps are still materialized (bf16); a halo /
    # strided in-kernel gather would remove this remaining HBM blow-up.
    w = p["w"]
    cout, cin, kt, kh, kw = w.shape
    st, sh, sw = stride
    pt, ph, pw = padding
    n, t, h, wd, _ = x.shape
    t_out = (t + 2 * pt - kt) // st + 1
    ho = (h + 2 * ph - kh) // sh + 1
    wo = (wd + 2 * pw - kw) // sw + 1

    scale, shift = _bn_fold(p)
    wt = (jnp.transpose(w, (2, 1, 3, 4, 0)).reshape(kt, cin * kh * kw, cout)
          * scale).astype(jnp.bfloat16)

    xp = jnp.pad(x, ((0, 0), (pt, pt), (ph, ph), (pw, pw), (0, 0)))
    cols = []
    for ih in range(kh):
        for iw in range(kw):
            cols.append(xp[:, :, ih::sh, iw::sw, :][:, :, :ho, :wo, :])
    patches = jnp.stack(cols, axis=-1)                # (N,Tp,Ho,Wo,Cin,KHW)
    patches = patches.reshape(n, t + 2 * pt, ho * wo, cin * kh * kw)

    y = _tap_conv(patches, wt, shift, None, t_out=t_out, t_stride=st, relu=relu)
    return y.reshape(n, t_out, ho, wo, cout)


# ----------------------------------------------------------------------------
# SlowFast model definition (parameters + forward), mirroring the PyTorch module
# ----------------------------------------------------------------------------
_MODEL_STAGE_DEPTH = {50: (3, 4, 6, 3), 101: (3, 4, 23, 3)}
_TEMPORAL_KERNEL_BASIS = [[[1], [5]], [[1], [3]], [[1], [3]], [[3], [3]], [[3], [3]]]
_POOL1 = [[1, 1, 1], [1, 1, 1]]  # 'slowfast' pathway pools -> identity MaxPool3d

CFG = dict(
    DEPTH=50,
    NUM_GROUPS=1,
    WIDTH_PER_GROUP=8,
    BETA_INV=4,
    ALPHA=4,
    FUSION_CONV_CHANNEL_RATIO=2,
    FUSION_KERNEL_SZ=5,
    INPUT_CHANNEL_NUM=(3, 3),
    NUM_FRAMES=8,
    CROP_SIZE=32,
    NUM_CLASSES=10,
    SPATIAL_STRIDES=((1, 1), (2, 2), (2, 2), (2, 2)),
    FC_INIT_STD=0.01,
)


class ParamFactory:
    """Deterministic synthetic parameter init (this is not a checkpoint load)."""

    def __init__(self, key):
        self._key = key
        self._i = 0

    def _next(self):
        k = jax.random.fold_in(self._key, self._i)
        self._i += 1
        return k

    def conv_bn(self, cout, cin, kt, kh, kw):
        fan_in = cin * kt * kh * kw
        w = jax.random.normal(self._next(), (cout, cin, kt, kh, kw),
                              jnp.float32) / jnp.sqrt(float(fan_in))
        return dict(
            w=w,
            gamma=jnp.ones((cout,), jnp.float32),
            beta=jnp.zeros((cout,), jnp.float32),
            rmean=jnp.zeros((cout,), jnp.float32),  # BN running mean (eval mode)
            rvar=jnp.ones((cout,), jnp.float32),    # BN running var  (eval mode)
        )

    def linear(self, din, dout, std):
        w = jax.random.normal(self._next(), (din, dout), jnp.float32) * std
        b = jnp.zeros((dout,), jnp.float32)
        return dict(w=w, b=b)


def build_params(cfg, pf):
    wpg = cfg["WIDTH_PER_GROUP"]
    beta = cfg["BETA_INV"]
    ratio = cfg["FUSION_CONV_CHANNEL_RATIO"]
    out_dim_ratio = beta // ratio
    dim_inner = cfg["NUM_GROUPS"] * wpg
    d2, d3, d4, d5 = _MODEL_STAGE_DEPTH[cfg["DEPTH"]]
    tk = _TEMPORAL_KERNEL_BASIS
    ss = cfg["SPATIAL_STRIDES"]

    def fuse(dim_f):
        return pf.conv_bn(dim_f * ratio, dim_f, cfg["FUSION_KERNEL_SZ"], 1, 1)

    def stage(dim_in, dim_out, dinner, temp, stride, nblocks):
        pathways = []
        for pw in range(2):
            blocks = []
            for i in range(nblocks):
                din = dim_in[pw] if i == 0 else dim_out[pw]
                s = stride[pw] if i == 0 else 1
                blk = {}
                if din != dim_out[pw] or s != 1:
                    blk["branch1"] = pf.conv_bn(dim_out[pw], din, 1, 1, 1)
                blk["a"] = pf.conv_bn(dinner[pw], din, temp[pw][0], 1, 1)
                blk["b"] = pf.conv_bn(dinner[pw], dinner[pw], 1, 3, 3)
                blk["c"] = pf.conv_bn(dim_out[pw], dinner[pw], 1, 1, 1)
                blocks.append(blk)
            pathways.append(blocks)
        return pathways

    params = {}
    params["s1"] = [
        pf.conv_bn(wpg, cfg["INPUT_CHANNEL_NUM"][0], tk[0][0][0], 7, 7),
        pf.conv_bn(wpg // beta, cfg["INPUT_CHANNEL_NUM"][1], tk[0][1][0], 7, 7),
    ]
    params["s1_fuse"] = fuse(wpg // beta)
    params["s2"] = stage([wpg + wpg // out_dim_ratio, wpg // beta],
                         [wpg * 4, wpg * 4 // beta],
                         [dim_inner, dim_inner // beta], tk[1], ss[0], d2)
    params["s2_fuse"] = fuse(wpg * 4 // beta)
    params["s3"] = stage([wpg * 4 + wpg * 4 // out_dim_ratio, wpg * 4 // beta],
                         [wpg * 8, wpg * 8 // beta],
                         [dim_inner * 2, dim_inner * 2 // beta], tk[2], ss[1], d3)
    params["s3_fuse"] = fuse(wpg * 8 // beta)
    params["s4"] = stage([wpg * 8 + wpg * 8 // out_dim_ratio, wpg * 8 // beta],
                         [wpg * 16, wpg * 16 // beta],
                         [dim_inner * 4, dim_inner * 4 // beta], tk[3], ss[2], d4)
    params["s4_fuse"] = fuse(wpg * 16 // beta)
    params["s5"] = stage([wpg * 16 + wpg * 16 // out_dim_ratio, wpg * 16 // beta],
                         [wpg * 32, wpg * 32 // beta],
                         [dim_inner * 8, dim_inner * 8 // beta], tk[4], ss[3], d5)
    params["head"] = pf.linear(wpg * 32 + wpg * 32 // beta, cfg["NUM_CLASSES"],
                               cfg["FC_INIT_STD"])
    return params


def stem_forward(x, p, temp_k):
    # ResNetBasicStem: conv[t,7,7]/s[1,2,2] + BN + ReLU + MaxPool3d[1,3,3]/s[1,2,2]
    x = conv_spatial_bn(x, p, stride=(1, 2, 2), padding=(temp_k // 2, 3, 3),
                        relu=True)
    return max_pool_1x3x3(x)


def fuse_forward(xs, p, cfg):
    # FuseFastToSlow: conv[k,1,1]/s[alpha,1,1] + BN + ReLU on fast, concat to slow
    x_s, x_f = xs
    fk = cfg["FUSION_KERNEL_SZ"]
    fused = conv_pointwise_bn(x_f, p, temp_k=fk, temp_stride=cfg["ALPHA"],
                              relu=True)
    return [jnp.concatenate([x_s, fused], axis=-1), x_f]


def block_forward(x, blk, temp_k, stride):
    # ResBlock with BottleneckTransform (STRIDE_1X1=False, groups=1, dilation=1)
    if "branch1" in blk:
        shortcut = conv_pointwise_bn(x, blk["branch1"], spatial_stride=stride,
                                     relu=False)
    else:
        shortcut = x
    h = conv_pointwise_bn(x, blk["a"], temp_k=temp_k, relu=True)
    h = conv_spatial_bn(h, blk["b"], stride=(1, stride, stride),
                        padding=(0, 1, 1), relu=True)
    # conv c + BN + residual-add + ReLU fused into one kernel epilogue
    return conv_pointwise_bn(h, blk["c"], residual=shortcut, relu=True)


def stage_forward(xs, stage_p, temp_ks, strides):
    out = []
    for pw in range(2):
        h = xs[pw]
        for i, blk in enumerate(stage_p[pw]):
            s = strides[pw] if i == 0 else 1
            h = block_forward(h, blk, temp_ks[pw], s)
        out.append(h)
    return out


def head_forward(xs, p):
    # ResNetBasicHead (eval): per-pathway global AvgPool3d, channel concat,
    # Linear, softmax, mean over the (1,1,1) spatial extent, flatten.
    pooled = [global_avg_pool(x) for x in xs]
    feat = jnp.concatenate(pooled, axis=-1)
    return linear_softmax(feat, p["w"], p["b"])


def slowfast_forward(x_slow, x_fast, params, cfg):
    tk = _TEMPORAL_KERNEL_BASIS
    ss = cfg["SPATIAL_STRIDES"]
    # PyTorch-style NCTHW -> channels-last NTHWC, bf16 activation stream.
    xs = [jnp.transpose(x_slow, (0, 2, 3, 4, 1)).astype(jnp.bfloat16),
          jnp.transpose(x_fast, (0, 2, 3, 4, 1)).astype(jnp.bfloat16)]
    xs = [stem_forward(xs[0], params["s1"][0], tk[0][0][0]),
          stem_forward(xs[1], params["s1"][1], tk[0][1][0])]
    xs = fuse_forward(xs, params["s1_fuse"], cfg)
    xs = stage_forward(xs, params["s2"], (tk[1][0][0], tk[1][1][0]), ss[0])
    xs = fuse_forward(xs, params["s2_fuse"], cfg)
    # pathway{0,1}_pool: MaxPool3d(kernel=[1,1,1], stride=[1,1,1]) == identity.
    xs = stage_forward(xs, params["s3"], (tk[2][0][0], tk[2][1][0]), ss[1])
    xs = fuse_forward(xs, params["s3_fuse"], cfg)
    xs = stage_forward(xs, params["s4"], (tk[3][0][0], tk[3][1][0]), ss[2])
    xs = fuse_forward(xs, params["s4_fuse"], cfg)
    xs = stage_forward(xs, params["s5"], (tk[4][0][0], tk[4][1][0]), ss[3])
    # TODO(synk): NONLOCAL blocks and enable_detection (RoI head) are disabled in
    # the reference default config and are not implemented here.
    return head_forward(xs, params["head"])


if __name__ == "__main__":
    cfg = CFG
    root = jax.random.PRNGKey(0)
    params = build_params(cfg, ParamFactory(jax.random.fold_in(root, 0)))

    n = 2
    x_fast = jax.random.normal(
        jax.random.fold_in(root, 1),
        (n, 3, cfg["NUM_FRAMES"], cfg["CROP_SIZE"], cfg["CROP_SIZE"]),
        jnp.float32)
    # slow pathway = fast clip temporally subsampled by ALPHA (as in PackPathway)
    x_slow = x_fast[:, :, ::cfg["ALPHA"]]

    out = slowfast_forward(x_slow, x_fast, params, cfg)
    out = jax.block_until_ready(out)
    assert out.shape == (n, cfg["NUM_CLASSES"]), out.shape
    assert bool(jnp.all(jnp.isfinite(out)))
    print("KERNEL_OK")
</pallas_src>

<mosaic_0001>
module attributes {stable_mosaic.version = 11 : i64} {
  func.func @kernel(%arg0: i32, %arg1: i32, %arg2: i32, %arg3: i32, %arg4: memref<1x1x256x147xbf16, #tpu.memory_space<vmem>>, %arg5: memref<1x147x8xbf16, #tpu.memory_space<vmem>>, %arg6: memref<1x8xf32, #tpu.memory_space<vmem>>, %arg7: memref<1x1x256x8xbf16, #tpu.memory_space<vmem>>, %arg8: memref<256x8xf32, #tpu.memory_space<vmem>>) attributes {dimension_semantics = [#tpu.dimension_semantics<parallel>, #tpu.dimension_semantics<parallel>, #tpu.dimension_semantics<parallel>, #tpu.dimension_semantics<arbitrary>], iteration_bounds = array<i64: 2, 2, 1, 1>, scalar_prefetch = 0 : i64, scratch_operands = 1 : i64, tpu.core_type = #tpu.core_type<tc>, window_params = [{transform_indices = @transform_0, window_bounds = array<i64: 1, 1, 256, 147>}, {transform_indices = @transform_1, window_bounds = array<i64: 1, 147, 8>}, {pipeline_mode = #tpu.pipeline_mode<synchronous>, transform_indices = @transform_2, window_bounds = array<i64: 1, 8>}, {transform_indices = @transform_3, window_bounds = array<i64: 1, 1, 256, 8>}]} {
    %c0_i32 = arith.constant 0 : i32
    %0 = arith.cmpi eq, %arg3, %c0_i32 : i32
    %1 = arith.extui %0 : i1 to i32
    %c0_i32_0 = arith.constant 0 : i32
    %2 = arith.cmpi ne, %1, %c0_i32_0 : i32
    scf.if %2 {
      %cst_13 = arith.constant 0.000000e+00 : f32
      %14 = vector.broadcast %cst_13 : f32 to vector<256x8xf32>
      %c0_14 = arith.constant 0 : index
      %c0_15 = arith.constant 0 : index
      %15 = vector.load %arg8[%c0_14, %c0_15] : memref<256x8xf32, #tpu.memory_space<vmem>>, vector<256x8xf32>
      tpu.vector_store %arg8[%c0_14, %c0_15], %14 {strides = array<i32>} : memref<256x8xf32, #tpu.memory_space<vmem>>, vector<256x8xf32>,
    } else {
    }
    %c0 = arith.constant 0 : index
    %c0_1 = arith.constant 0 : index
    %3 = vector.load %arg8[%c0, %c0_1] : memref<256x8xf32, #tpu.memory_space<vmem>>, vector<256x8xf32>
    %c0_2 = arith.constant 0 : index
    %c0_3 = arith.constant 0 : index
    %c0_4 = arith.constant 0 : index
    %c0_5 = arith.constant 0 : index
    %4 = vector.load %arg4[%c0_2, %c0_3, %c0_4, %c0_5] : memref<1x1x256x147xbf16, #tpu.memory_space<vmem>>, vector<1x1x256x147xbf16>
    %5 = vector.shape_cast %4 : vector<1x1x256x147xbf16> to vector<256x147xbf16>
    %c0_6 = arith.constant 0 : index
    %c0_7 = arith.constant 0 : index
    %c0_8 = arith.constant 0 : index
    %6 = vector.load %arg5[%c0_6, %c0_7, %c0_8] : memref<1x147x8xbf16, #tpu.memory_space<vmem>>, vector<1x147x8xbf16>
    %7 = vector.shape_cast %6 : vector<1x147x8xbf16> to vector<147x8xbf16>
    %cst = arith.constant dense<0.000000e+00> : vector<256x8xf32>
    %8 = tpu.matmul %5, %7, %cst {dimension_numbers = #tpu.dot_dimension_numbers<[1], [0], [0], [1], [0, 0, 1, 1], [], []>} : vector<256x147xbf16>, vector<147x8xbf16>, vector<256x8xf32> -> vector<256x8xf32>
    %9 = arith.addf %3, %8 : vector<256x8xf32>
    %c0_9 = arith.constant 0 : index
    %c0_10 = arith.constant 0 : index
    %10 = vector.load %arg8[%c0_9, %c0_10] : memref<256x8xf32, #tpu.memory_space<vmem>>, vector<256x8xf32>
    tpu.vector_store %arg8[%c0_9, %c0_10], %9 {strides = array<i32>} : memref<256x8xf32, #tpu.memory_space<vmem>>, vector<256x8xf32>,
    %c0_i32_11 = arith.constant 0 : i32
    %11 = arith.cmpi eq, %arg3, %c0_i32_11 : i32
    %12 = arith.extui %11 : i1 to i32
    %c0_i32_12 = arith.constant 0 : i32
    %13 = arith.cmpi ne, %12, %c0_i32_12 : i32
    scf.if %13 {
      %c0_13 = arith.constant 0 : index
      %c0_14 = arith.constant 0 : index
      %14 = vector.load %arg8[%c0_13, %c0_14] : memref<256x8xf32, #tpu.memory_space<vmem>>, vector<256x8xf32>
      %c0_15 = arith.constant 0 : index
      %c0_16 = arith.constant 0 : index
      %15 = vector.load %arg6[%c0_15, %c0_16] : memref<1x8xf32, #tpu.memory_space<vmem>>, vector<1x8xf32>
      %16 = vector.broadcast %15 : vector<1x8xf32> to vector<256x8xf32>
      %17 = arith.addf %14, %16 : vector<256x8xf32>
      %cst_17 = arith.constant 0.000000e+00 : f32
      %18 = vector.broadcast %cst_17 : f32 to vector<256x8xf32>
      %19 = arith.maximumf %17, %18 : vector<256x8xf32>
      %20 = arith.truncf %19 : vector<256x8xf32> to vector<256x8xbf16>
      %c0_18 = arith.constant 0 : index
      %c0_19 = arith.constant 0 : index
      %c0_20 = arith.constant 0 : index
      %c0_21 = arith.constant 0 : index
      %21 = vector.load %arg7[%c0_18, %c0_19, %c0_20, %c0_21] : memref<1x1x256x8xbf16, #tpu.memory_space<vmem>>, vector<1x1x256x8xbf16>
      %22 = vector.shape_cast %21 : vector<1x1x256x8xbf16> to vector<256x8xbf16>
      %23 = vector.shape_cast %20 : vector<256x8xbf16> to vector<1x1x256x8xbf16>
      tpu.vector_store %arg7[%c0_18, %c0_19, %c0_20, %c0_21], %23 {strides = array<i32>} : memref<1x1x256x8xbf16, #tpu.memory_space<vmem>>, vector<1x1x256x8xbf16>,
    } else {
    }
    return
  }
  func.func @transform_0(%arg0: i32, %arg1: i32, %arg2: i32, %arg3: i32) -> (i32, i32, i32, i32) {
    %c1_i32 = arith.constant 1 : i32
    %0 = arith.muli %arg1, %c1_i32 : i32
    %1 = arith.addi %0, %arg3 : i32
    %c0_i32 = arith.constant 0 : i32
    %c0_i32_0 = arith.constant 0 : i32
    return %arg0, %1, %arg2, %c0_i32 : i32, i32, i32, i32
  }
  func.func @transform_1(%arg0: i32, %arg1: i32, %arg2: i32, %arg3: i32) -> (i32, i32, i32) {
    %c0_i32 = arith.constant 0 : i32
    %c0_i32_0 = arith.constant 0 : i32
    %c0_i32_1 = arith.constant 0 : i32
    return %arg3, %c0_i32, %c0_i32_0 : i32, i32, i32
  }
  func.func @transform_2(%arg0: i32, %arg1: i32, %arg2: i32, %arg3: i32) -> (i32, i32) {
    %c0_i32 = arith.constant 0 : i32
    %c0_i32_0 = arith.constant 0 : i32
    %c0_i32_1 = arith.constant 0 : i32
    return %c0_i32, %c0_i32_0 : i32, i32
  }
  func.func @transform_3(%arg0: i32, %arg1: i32, %arg2: i32, %arg3: i32) -> (i32, i32, i32, i32) {
    %c0_i32 = arith.constant 0 : i32
    %c0_i32_0 = arith.constant 0 : i32
    return %arg0, %arg1, %arg2, %c0_i32 : i32, i32, i32, i32
  }
}

</mosaic_0001>

<bundles_post_ra>
// kernel: conv_spatial_bn.1
= control target key start
LH: loop header
LB: loop body
LE: loop exit
PB: predicated region body
PF: predicated region fallthrough
CT: control target
= control target key end

     0   :  { %s1606_s12 = smov 0   ;;  %s1608_s13 = smov 0   ;;  %s1947_s0 = inlined_call_operand.vmem [shape: bf16[2,2,256,147], index: 0, kind: input, shape index: {}]   ;;  %s1948_s1 = inlined_call_operand.vmem [shape: bf16[1,147,8], index: 1, kind: input, shape index: {}]   ;;  %s1949_s2 = inlined_call_operand.vmem [shape: f32[1,8], index: 2, kind: input, shape index: {}]   ;;  %s1950_s3 = inlined_call_operand.vmem [shape: bf16[2,2,256,8], index: 3, kind: output, shape index: {}]  }
   0x1   :  { %s1610_s14 = smov 0   ;;  %s1612_s15 = smov 0  }
   0x2   :  { %s1614_s16 = smov 0  }
   0x3 LB: > { %s35_s17 = sadd.s32 1, %s1573_s14  ;;  %s39_s18 = sadd.s32 1, %s1577_s15  ;;  %s1581_s16 = sphi %s1614_s16, %s13_s16   ;;  %s1577_s15 = sphi %s1612_s15, %s1954_s15   ;;  %s1573_s14 = sphi %s1610_s14, %s1953_s14   ;;  %s1569_s13 = sphi %s1608_s13, %s1952_s13   ;;  %s1565_s12 = sphi %s1606_s12, %s1951_s12  }
   0x4   : > { %p37_p0 = scmp.ge.s32.totalorder %s35_s17, 2  ;;  %p1290_p1 = scmp.ge.s32.totalorder %s1581_s16, 1 }
   0x5   : > { %p195_p2 = scmp.lt.s32.totalorder %s1581_s16, 5 }
   0x6   : > { %s1956_s17 = smov (%p37_p0, %s35_s17), 0  ;;  %s1958_s18 = smov (!%p37_p0, %s39_s18), %s1577_s15 }
   0x7   : > { %p196_p3 = pnand %p1290_p1, %p195_p2  ;;  %p41_p4 = scmp.ge.s32.totalorder %s1958_s18, 2 }
   0x8   : > { %p244_p5 = scmp.lt.s32.totalorder (!%p196_p3), %s1569_s13, 1  ;;  %p246_p6 = scmp.lt.s32.totalorder (!%p196_p3), %s1565_s12, 1 }
   0x9   : > { %s1960_s18 = smov (%p41_p4, %s1958_s18), 0  ;;  %199 = sbr.rel (%p196_p3) target bundleno = 326 (0x146), region = 32 }
   0xe   : > { %v1485_v0 = vld [vmem:[%s1948_s1 + $0x38] sm:$0xff]   ;;  %v1583_v1 = vmov 0   ;;  %v1486_v2 = vld [vmem:[%s1948_s1 + $0x30] sm:$0xff]   ;;  %v1487_v3 = vld [vmem:[%s1948_s1 + $0x28] sm:$0xff]   ;;  %s1962_s13 = smov (!%p244_p5, %s1569_s13), 1  ;;  %s1964_s12 = smov (!%p246_p6, %s1565_s12), 1 }
   0xf   : > { %656 = vmatprep.subr.bf16.mxu0 %v1583_v1  ;;  %1422 = vmatprep.subr.bf16.mxu1 %v1583_v1  ;;  %v1488_v4 = vld [vmem:[%s1948_s1 + $0x20] sm:$0xff]   ;;  %vm283_vm0 = vcmask 64512   ;;  %s1292_s27 = sshll.u32 %s1962_s13, 7  ;;  %s1295_s28 = sshll.u32 %s1962_s13, 6  ;;  %v1584_v5 = vmov 0.0   ;;  %v1489_v6 = vld [vmem:[%s1948_s1 + $0x18] sm:$0xff]  }
  0x10   : > { %657 = vmatpush1.bf16.msra.mxu0 %v1485_v0  ;;  %1432 = vmatpush1.bf16.msra.mxu1 %v1485_v0  ;;  %284 = vst.msk [vmem:[#allocation2] sm:$0xff] %vm283_vm0, %v1584_v5  ;;  %285 = vst.msk [vmem:[#allocation2 + $0x8] sm:$0xff] %vm283_vm0, %v1584_v5  ;;  %s1291_s29 = sshll.u32 %s1964_s12, 6  ;;  %s1294_s30 = sshll.u32 %s1964_s12, 5  ;;  %vm600_vm1 = vcmask 154624   ;;  %v1490_v8 = vld [vmem:[%s1948_s1 + $0x10] sm:$0xff]  }
  0x11   : > { %658 = vmatprep.subr.bf16.mxu0 %v1583_v1  ;;  %1423 = vmatprep.subr.bf16.mxu1 %v1583_v1  ;;  %286 = vst.msk [vmem:[#allocation2 + $0x10] sm:$0xff] %vm283_vm0, %v1584_v5  ;;  %287 = vst.msk [vmem:[#allocation2 + $0x18] sm:$0xff] %vm283_vm0, %v1584_v5  ;;  %s254_s4 = sadd.s32 %s1292_s27, %s1291_s29  ;;  %s1708_s5 = sadd.s32 %s1295_s28, %s1294_s30  ;;  %vm649_vm2 = vcmask 1040384   ;;  %v1491_v10 = vld [vmem:[%s1948_s1 + $0x8] sm:$0xff]   ;;  %vm650_vm3 = vcmask 1041408   ;;  %v1585_v11 = vmov 65535  }
  0x12   : > { %288 = vst.msk [vmem:[#allocation2 + $0x20] sm:$0xff] %vm283_vm0, %v1584_v5  ;;  %289 = vst.msk [vmem:[#allocation2 + $0x28] sm:$0xff] %vm283_vm0, %v1584_v5  ;;  %s1293_s8 = sshll.u32 %s254_s4, 2  ;;  %v651_v12 = vsel %vm649_vm2, 4294967295, %v1585_v11  ;;  %v1492_v13 = vld [vmem:[%s1948_s1] sm:$0xff]   ;;  %s1296_s29 = sshll.u32 %s1708_s5, 2 }
  0x13   : > { %290 = vst.msk [vmem:[#allocation2 + $0x30] sm:$0xff] %vm283_vm0, %v1584_v5  ;;  %291 = vst.msk [vmem:[#allocation2 + $0x38] sm:$0xff] %vm283_vm0, %v1584_v5  ;;  %s1718_s11 = scalar_lea.vmem %s1947_s0, %s1293_s8  ;;  %v1493_v14 = vld [vmem:[%s1948_s1 + $0x48] ss:$0 sps:$4 sm:$0x33]   ;;  %v652_v15 = vsel %vm650_vm3, %v651_v12, 0  ;;  %s1810_s6 = scalar_lea.vmem %s1950_s3, %s1296_s29 }
  0x14   : > { %659 = vmatpush1.bf16.msra.mxu0 %v1486_v2  ;;  %1433 = vmatpush1.bf16.msra.mxu1 %v1486_v2  ;;  %292 = vst.msk [vmem:[#allocation2 + $0x40] sm:$0xff] %vm283_vm0, %v1584_v5  ;;  %293 = vst.msk [vmem:[#allocation2 + $0x48] sm:$0xff] %vm283_vm0, %v1584_v5  ;;  %v1497_v7 = vld [vmem:[%s1718_s11 + $0x4] ss:$8 sps:$4 sm:$0xff]   ;;  %v654_v16 = vand.u32 %v1493_v14, %v652_v15  ;;  %v1495_v18 = vld [vmem:[%s1718_s11] ss:$8 sps:$4 sm:$0xff]  }
  0x15   : > { %660 = vmatprep.subr.bf16.mxu0 %v1583_v1  ;;  %1424 = vmatprep.subr.bf16.mxu1 %v1583_v1  ;;  %294 = vst.msk [vmem:[#allocation2 + $0x50] sm:$0xff] %vm283_vm0, %v1584_v5  ;;  %295 = vst.msk [vmem:[#allocation2 + $0x58] sm:$0xff] %vm283_vm0, %v1584_v5  ;;  %v1500_v9 = vld [vmem:[%s1718_s11 + $0x84] ss:$8 sps:$4 sm:$0xff]   ;;  %v1498_v19 = vld [vmem:[%s1718_s11 + $0x80] ss:$8 sps:$4 sm:$0xff]  }
  0x16   : > { %296 = vst.msk [vmem:[#allocation2 + $0x60] sm:$0xff] %vm283_vm0, %v1584_v5  ;;  %297 = vst.msk [vmem:[#allocation2 + $0x68] sm:$0xff] %vm283_vm0, %v1584_v5  ;;  %1339 = vmatprep.mubr.msk.bf16.mxu0 %vm600_vm1, %v1497_v7  ;;  %1347 = vmatprep.mubr.msk.bf16.mxu1 %vm600_vm1, %v1500_v9  ;;  %v1494_v17 = vld [vmem:[%s1948_s1 + $0x40] sm:$0xff]   ;;  %v1501_v20 = vld [vmem:[%s1718_s11 + $0x14] ss:$8 sps:$4 sm:$0xff]   ;;  %vm1116_vm4 = vcmask 60416  }
  0x17   : > { %298 = vst.msk [vmem:[#allocation2 + $0x70] sm:$0xff] %vm283_vm0, %v1584_v5  ;;  %299 = vst.msk [vmem:[#allocation2 + $0x78] sm:$0xff] %vm283_vm0, %v1584_v5  ;;  %v1503_v21 = vld [vmem:[%s1718_s11 + $0x94] ss:$8 sps:$4 sm:$0xff]   ;;  %v1505_v22 = vld [vmem:[%s1718_s11 + $0x10] ss:$8 sps:$4 sm:$0xff]  }
  0x18   : > { %661 = vmatpush1.bf16.msra.mxu0 %v1487_v3  ;;  %1434 = vmatpush1.bf16.msra.mxu1 %v1487_v3  ;;  %300 = vst.msk [vmem:[#allocation2 + $0x80] sm:$0xff] %vm283_vm0, %v1584_v5  ;;  %301 = vst.msk [vmem:[#allocation2 + $0x88] sm:$0xff] %vm283_vm0, %v1584_v5  ;;  %v1506_v23 = vld [vmem:[%s1718_s11 + $0x90] ss:$8 sps:$4 sm:$0xff]   ;;  %v1507_v24 = vld [vmem:[%s1718_s11 + $0x24] ss:$8 sps:$4 sm:$0xff]  }
  0x19   : > { %662 = vmatprep.subr.bf16.mxu0 %v1583_v1  ;;  %1425 = vmatprep.subr.bf16.mxu1 %v1583_v1  ;;  %302 = vst.msk [vmem:[#allocation2 + $0x90] sm:$0xff] %vm283_vm0, %v1584_v5  ;;  %303 = vst.msk [vmem:[#allocation2 + $0x98] sm:$0xff] %vm283_vm0, %v1584_v5  ;;  %v1509_v25 = vld [vmem:[%s1718_s11 + $0xa4] ss:$8 sps:$4 sm:$0xff]   ;;  %v1511_v26 = vld [vmem:[%s1718_s11 + $0x20] ss:$8 sps:$4 sm:$0xff]  }
  0x1a   : > { %304 = vst.msk [vmem:[#allocation2 + $0xa0] sm:$0xff] %vm283_vm0, %v1584_v5  ;;  %305 = vst.msk [vmem:[#allocation2 + $0xa8] sm:$0xff] %vm283_vm0, %v1584_v5  ;;  %v1512_v27 = vld [vmem:[%s1718_s11 + $0xa0] ss:$8 sps:$4 sm:$0xff]   ;;  %v1513_v28 = vld [vmem:[%s1718_s11 + $0x34] ss:$8 sps:$4 sm:$0xff]  }
  0x1b   : > { %306 = vst.msk [vmem:[#allocation2 + $0xb0] sm:$0xff] %vm283_vm0, %v1584_v5  ;;  %307 = vst.msk [vmem:[#allocation2 + $0xb8] sm:$0xff] %vm283_vm0, %v1584_v5  ;;  %v1515_v29 = vld [vmem:[%s1718_s11 + $0xb4] ss:$8 sps:$4 sm:$0xff]   ;;  %v1517_v30 = vld [vmem:[%s1718_s11 + $0x30] ss:$8 sps:$4 sm:$0xff]  }
  0x1c   : > { %308 = vst.msk [vmem:[#allocation2 + $0xc0] sm:$0xff] %vm283_vm0, %v1584_v5  ;;  %309 = vst.msk [vmem:[#allocation2 + $0xc8] sm:$0xff] %vm283_vm0, %v1584_v5  ;;  %663 = vmatpush1.bf16.msra.mxu0 %v1488_v4  ;;  %1435 = vmatpush1.bf16.msra.mxu1 %v1488_v4  ;;  %v1518_v31 = vld [vmem:[%s1718_s11 + $0xb0] ss:$8 sps:$4 sm:$0xff]   ;;  %v1519_v32 = vld [vmem:[%s1718_s11 + $0x44] ss:$8 sps:$4 sm:$0xff]  }
  0x1d   : > { %310 = vst.msk [vmem:[#allocation2 + $0xd0] sm:$0xff] %vm283_vm0, %v1584_v5  ;;  %311 = vst.msk [vmem:[#allocation2 + $0xd8] sm:$0xff] %vm283_vm0, %v1584_v5  ;;  %664 = vmatprep.subr.bf16.mxu0 %v1583_v1  ;;  %1426 = vmatprep.subr.bf16.mxu1 %v1583_v1  ;;  %v1521_v33 = vld [vmem:[%s1718_s11 + $0xc4] ss:$8 sps:$4 sm:$0xff]   ;;  %v1523_v34 = vld [vmem:[%s1718_s11 + $0x40] ss:$8 sps:$4 sm:$0xff]  }
  0x1e   : > { %312 = vst.msk [vmem:[#allocation2 + $0xe0] sm:$0xff] %vm283_vm0, %v1584_v5  ;;  %313 = vst.msk [vmem:[#allocation2 + $0xe8] sm:$0xff] %vm283_vm0, %v1584_v5  ;;  %v1524_v35 = vld [vmem:[%s1718_s11 + $0xc0] ss:$8 sps:$4 sm:$0xff]   ;;  %v1525_v36 = vld [vmem:[%s1718_s11 + $0x54] ss:$8 sps:$4 sm:$0xff]  }
  0x1f   : > { %314 = vst.msk [vmem:[#allocation2 + $0xf0] sm:$0xff] %vm283_vm0, %v1584_v5  ;;  %315 = vst.msk [vmem:[#allocation2 + $0xf8] sm:$0xff] %vm283_vm0, %v1584_v5  ;;  %v1527_v37 = vld [vmem:[%s1718_s11 + $0xd4] ss:$8 sps:$4 sm:$0xff]   ;;  %v1529_v38 = vld [vmem:[%s1718_s11 + $0x50] ss:$8 sps:$4 sm:$0xff]  }
  0x20   : > { %665 = vmatpush1.bf16.msra.mxu0 %v1489_v6  ;;  %1436 = vmatpush1.bf16.msra.mxu1 %v1489_v6  ;;  %v1530_v39 = vld [vmem:[%s1718_s11 + $0xd0] ss:$8 sps:$4 sm:$0xff]   ;;  %v1531_v40 = vld [vmem:[%s1718_s11 + $0x64] ss:$8 sps:$4 sm:$0xff]   ;;  %v1535_v42 = vld [vmem:[%s1718_s11 + $0x60] ss:$8 sps:$4 sm:$0xff]  }
  0x21   : > { %666 = vmatprep.subr.bf16.mxu0 %v1583_v1  ;;  %1427 = vmatprep.subr.bf16.mxu1 %v1583_v1  ;;  %v1533_v41 = vld [vmem:[%s1718_s11 + $0xe4] ss:$8 sps:$4 sm:$0xff]   ;;  %v1536_v43 = vld [vmem:[%s1718_s11 + $0xe0] ss:$8 sps:$4 sm:$0xff]   ;;  %v1537_v44 = vld [vmem:[%s1718_s11 + $0x74] ss:$8 sps:$4 sm:$0xff]  }
  0x22   : > { %v1539_v45 = vld [vmem:[%s1718_s11 + $0xf4] ss:$8 sps:$4 sm:$0xff]   ;;  %v1541_v46 = vld [vmem:[%s1718_s11 + $0x70] ss:$8 sps:$4 sm:$0xff]   ;;  %v316_v48 = vld [vmem:[#allocation2] sm:$0xff] }
  0x23   : > { %v1542_v47 = vld [vmem:[%s1718_s11 + $0xf0] ss:$8 sps:$4 sm:$0xff]   ;;  %v332_v49 = vld [vmem:[#allocation2 + $0x80] sm:$0xff]  ;;  %v317_v56 = vld [vmem:[#allocation2 + $0x8] sm:$0xff] }
  0x24   : > { %667 = vmatpush1.bf16.msra.mxu0 %v1490_v8  ;;  %1437 = vmatpush1.bf16.msra.mxu1 %v1490_v8  ;;  %v333_v57 = vld [vmem:[#allocation2 + $0x88] sm:$0xff]  ;;  %v318_v0 = vld [vmem:[#allocation2 + $0x10] sm:$0xff]  ;;  %v1800_v2 = vld [vmem:[%s1949_s2] ss:$0 sm:$0xff] }
  0x25   : > { %668 = vmatprep.subr.bf16.mxu0 %v1583_v1  ;;  %1428 = vmatprep.subr.bf16.mxu1 %v1583_v1  ;;  %v319_v7 = vld [vmem:[#allocation2 + $0x18] sm:$0xff] }
  0x26   : > { %v335_v12 = vld [vmem:[#allocation2 + $0x98] sm:$0xff] }
  0x28   : > { %669 = vmatpush1.bf16.msra.mxu0 %v1491_v10  ;;  %1438 = vmatpush1.bf16.msra.mxu1 %v1491_v10 }
  0x29   : > { %670 = vmatprep.subr.bf16.mxu0 %v1583_v1  ;;  %1429 = vmatprep.subr.bf16.mxu1 %v1583_v1 }
  0x2c   : > { %671 = vmatpush1.bf16.msra.mxu0 %v1492_v13  ;;  %1439 = vmatpush1.bf16.msra.mxu1 %v1492_v13 }
  0x2d   : > { %684 = vmatprep.subr.bf16.mxu0 %v1583_v1  ;;  %1430 = vmatprep.subr.bf16.mxu1 %v1583_v1 }
  0x30   : > { %685 = vmatpush2.bf16.msra.mxu0 %v654_v16  ;;  %1440 = vmatpush2.bf16.msra.mxu1 %v654_v16 }
  0x31   : > { %686 = vmatprep.subr.bf16.mxu0 %v1583_v1  ;;  %1431 = vmatprep.subr.bf16.mxu1 %v1583_v1  ;;  %v334_v1 = vld [vmem:[#allocation2 + $0x90] sm:$0xff] }
  0x34   : > { %687 = vmatpush2.bf16.msra.mxu0 %v1494_v17  ;;  %1441 = vmatpush2.bf16.msra.mxu1 %v1494_v17 }
  0x37   : > { %689 = vmatmul.mubr.bf16.vlgmr.msra.gmra.mxu0 %v1495_v18  ;;  %753 = vmatmul.mubr.bf16.vlgmr.msra.gmra.mxu1 %v1498_v19 }
  0x38   : > { %1340 = vmatprep.mubr.msk.bf16.mxu0 %vm600_vm1, %v1501_v20  ;;  %1348 = vmatprep.mubr.msk.bf16.mxu1 %vm600_vm1, %v1503_v21  ;;  %v320_v21 = vld [vmem:[#allocation2 + $0x20] sm:$0xff] }
  0x3f   : > { %697 = vmatmul.mubr.bf16.gmra.mxu0 %v1505_v22  ;;  %761 = vmatmul.mubr.bf16.gmra.mxu1 %v1506_v23 }
  0x40   : > { %1341 = vmatprep.mubr.msk.bf16.mxu0 %vm600_vm1, %v1507_v24  ;;  %1349 = vmatprep.mubr.msk.bf16.mxu1 %vm600_vm1, %v1509_v25 }
  0x47   : > { %705 = vmatmul.mubr.bf16.gmra.mxu0 %v1511_v26  ;;  %769 = vmatmul.mubr.bf16.gmra.mxu1 %v1512_v27  ;;  %v336_v26 = vld [vmem:[#allocation2 + $0xa0] sm:$0xff] }
  0x48   : > { %1342 = vmatprep.mubr.msk.bf16.mxu0 %vm600_vm1, %v1513_v28  ;;  %1350 = vmatprep.mubr.msk.bf16.mxu1 %vm600_vm1, %v1515_v29 }
  0x4f   : > { %713 = vmatmul.mubr.bf16.gmra.mxu0 %v1517_v30  ;;  %777 = vmatmul.mubr.bf16.gmra.mxu1 %v1518_v31 }
  0x50   : > { %1343 = vmatprep.mubr.msk.bf16.mxu0 %vm600_vm1, %v1519_v32  ;;  %1351 = vmatprep.mubr.msk.bf16.mxu1 %vm600_vm1, %v1521_v33 }
  0x57   : > { %721 = vmatmul.mubr.bf16.gmra.mxu0 %v1523_v34  ;;  %785 = vmatmul.mubr.bf16.gmra.mxu1 %v1524_v35 }
  0x58   : > { %1344 = vmatprep.mubr.msk.bf16.mxu0 %vm600_vm1, %v1525_v36  ;;  %1352 = vmatprep.mubr.msk.bf16.mxu1 %vm600_vm1, %v1527_v37  ;;  %v321_v37 = vld [vmem:[#allocation2 + $0x28] sm:$0xff] }
  0x5f   : > { %729 = vmatmul.mubr.bf16.gmra.mxu0 %v1529_v38  ;;  %793 = vmatmul.mubr.bf16.gmra.mxu1 %v1530_v39 }
  0x60   : > { %1345 = vmatprep.mubr.msk.bf16.mxu0 %vm600_vm1, %v1531_v40  ;;  %1353 = vmatprep.mubr.msk.bf16.mxu1 %vm600_vm1, %v1533_v41 }
  0x67   : > { %737 = vmatmul.mubr.bf16.gmra.mxu0 %v1535_v42  ;;  %801 = vmatmul.mubr.bf16.gmra.mxu1 %v1536_v43  ;;  %v337_v42 = vld [vmem:[#allocation2 + $0xa8] sm:$0xff] }
  0x68   : > { %1346 = vmatprep.mubr.msk.bf16.mxu0 %vm600_vm1, %v1537_v44  ;;  %1354 = vmatprep.mubr.msk.bf16.mxu1 %vm600_vm1, %v1539_v45 }
  0x6f   : > { %745 = vmatmul.mubr.bf16.gmra.mxu0 %v1541_v46  ;;  %809 = vmatmul.mubr.bf16.gmra.mxu1 %v1542_v47 }
  0xf7   : > { %v690_v50 = vpop.f32.mrf.mxu0  ;;  %v754_v51 = vpop.f32.mrf.mxu1 }
  0xf8   : > { %v817_v52 = vadd.f32 %v690_v50, %v316_v48  ;;  %v833_v53 = vadd.f32 %v754_v51, %v332_v49 }
  0xf9   : > { %v692_v54 = vpop.f32.mrf.mxu0  ;;  %v756_v55 = vpop.f32.mrf.mxu1 }
  0xfa   : > { %850 = vst.msk [vmem:[#allocation2] sm:$0xff] %vm283_vm0, %v817_v52  ;;  %866 = vst.msk [vmem:[#allocation2 + $0x80] sm:$0xff] %vm283_vm0, %v833_v53  ;;  %v322_v53 = vld [vmem:[#allocation2 + $0x30] sm:$0xff] }
  0xfb   : > { %v693_v58 = vpop.f32.mrf.mxu0  ;;  %v757_v59 = vpop.f32.mrf.mxu1 }
  0xfc   : > { %v818_v60 = vadd.f32 %v693_v58, %v317_v56  ;;  %v834_v61 = vadd.f32 %v757_v59, %v333_v57  ;;  %v338_v58 = vld [vmem:[#allocation2 + $0xb0] sm:$0xff] }
  0xfd   : > { %v695_v62 = vpop.f32.mrf.mxu0  ;;  %v759_v63 = vpop.f32.mrf.mxu1 }
  0xfe   : > { %851 = vst.msk [vmem:[#allocation2 + $0x8] sm:$0xff] %vm283_vm0, %v818_v60  ;;  %867 = vst.msk [vmem:[#allocation2 + $0x88] sm:$0xff] %vm283_vm0, %v834_v61 }
  0xff   : > { %v698_v3 = vpop.f32.mrf.mxu0  ;;  %v762_v4 = vpop.f32.mrf.mxu1 }
 0x100   : > { %v819_v5 = vadd.f32 %v698_v3, %v318_v0  ;;  %v835_v6 = vadd.f32 %v762_v4, %v334_v1 }
 0x101   : > { %v885_v8 = vld [vmem:[#allocation2] sm:$0xff]  ;;  %v700_v10 = vpop.f32.mrf.mxu0  ;;  %v764_v11 = vpop.f32.mrf.mxu1 }
 0x102   : > { %v901_v9 = vld [vmem:[#allocation2 + $0x80] sm:$0xff]  ;;  %v924_v13 = vadd.f32 %v1800_v2, %v885_v8  ;;  %852 = vst.msk [vmem:[#allocation2 + $0x10] sm:$0xff] %vm283_vm0, %v819_v5  ;;  %868 = vst.msk [vmem:[#allocation2 + $0x90] sm:$0xff] %vm283_vm0, %v835_v6  ;;  %v323_v6 = vld [vmem:[#allocation2 + $0x38] sm:$0xff] }
 0x103   : > { %v940_v14 = vadd.f32 %v1800_v2, %v901_v9  ;;  %v701_v15 = vpop.f32.mrf.mxu0  ;;  %v765_v16 = vpop.f32.mrf.mxu1  ;;  %v339_v11 = vld [vmem:[#allocation2 + $0xb8] sm:$0xff] }
 0x104   : > { %v956_v17 = vmax.f32 %v924_v13, 0.0  ;;  %v820_v19 = vadd.f32 %v701_v15, %v319_v7  ;;  %v836_v20 = vadd.f32 %v765_v16, %v335_v12 }
 0x105   : > { %v972_v18 = vmax.f32 %v940_v14, 0.0  ;;  %v886_v22 = vld [vmem:[#allocation2 + $0x8] sm:$0xff]  ;;  %v703_v24 = vpop.f32.mrf.mxu0  ;;  %v767_v25 = vpop.f32.mrf.mxu1 }
 0x106   : > { %v902_v23 = vld [vmem:[#allocation2 + $0x88] sm:$0xff]  ;;  %v1390_v27 = vpack.c.bf16 %v956_v17, %v956_v17  ;;  %v925_v29 = vadd.f32 %v1800_v2, %v886_v22  ;;  %853 = vst.msk [vmem:[#allocation2 + $0x18] sm:$0xff] %vm283_vm0, %v820_v19  ;;  %869 = vst.msk [vmem:[#allocation2 + $0x98] sm:$0xff] %vm283_vm0, %v836_v20  ;;  %v324_v22 = vld [vmem:[#allocation2 + $0x40] sm:$0xff] }
 0x107   : > { %v1406_v28 = vpack.c.bf16 %v972_v18, %v972_v18  ;;  %v941_v30 = vadd.f32 %v1800_v2, %v902_v23  ;;  %v706_v31 = vpop.f32.mrf.mxu0  ;;  %v770_v32 = vpop.f32.mrf.mxu1 }
 0x108   : > { %1117 = vst.msk [vmem:[%s1810_s6] sm:$0xf] %vm1116_vm4, %v1390_v27  ;;  %v957_v33 = vmax.f32 %v925_v29, 0.0  ;;  %v821_v35 = vadd.f32 %v706_v31, %v320_v21  ;;  %v837_v36 = vadd.f32 %v770_v32, %v336_v26  ;;  %v340_v27 = vld [vmem:[#allocation2 + $0xc0] sm:$0xff] }
 0x109   : > { %1133 = vst.msk [vmem:[%s1810_s6 + $0x40] sm:$0xf] %vm1116_vm4, %v1406_v28  ;;  %v973_v34 = vmax.f32 %v941_v30, 0.0  ;;  %v887_v38 = vld [vmem:[#allocation2 + $0x10] sm:$0xff]  ;;  %v708_v40 = vpop.f32.mrf.mxu0  ;;  %v772_v41 = vpop.f32.mrf.mxu1 }
 0x10a   : > { %v903_v39 = vld [vmem:[#allocation2 + $0x90] sm:$0xff]  ;;  %v1391_v43 = vpack.c.bf16 %v957_v33, %v957_v33  ;;  %v926_v45 = vadd.f32 %v1800_v2, %v887_v38  ;;  %854 = vst.msk [vmem:[#allocation2 + $0x20] sm:$0xff] %vm283_vm0, %v821_v35  ;;  %870 = vst.msk [vmem:[#allocation2 + $0xa0] sm:$0xff] %vm283_vm0, %v837_v36  ;;  %v325_v38 = vld [vmem:[#allocation2 + $0x48] sm:$0xff] }
 0x10b   : > { %v1407_v44 = vpack.c.bf16 %v973_v34, %v973_v34  ;;  %v942_v46 = vadd.f32 %v1800_v2, %v903_v39  ;;  %v709_v47 = vpop.f32.mrf.mxu0  ;;  %v773_v48 = vpop.f32.mrf.mxu1 }
 0x10c   : > { %1118 = vst.msk [vmem:[%s1810_s6 + $0x4] sm:$0xf] %vm1116_vm4, %v1391_v43  ;;  %v958_v49 = vmax.f32 %v926_v45, 0.0  ;;  %v822_v51 = vadd.f32 %v709_v47, %v321_v37  ;;  %v838_v52 = vadd.f32 %v773_v48, %v337_v42  ;;  %v341_v43 = vld [vmem:[#allocation2 + $0xc8] sm:$0xff] }
 0x10d   : > { %1134 = vst.msk [vmem:[%s1810_s6 + $0x44] sm:$0xf] %vm1116_vm4, %v1407_v44  ;;  %v974_v50 = vmax.f32 %v942_v46, 0.0  ;;  %v888_v54 = vld [vmem:[#allocation2 + $0x18] sm:$0xff]  ;;  %v711_v56 = vpop.f32.mrf.mxu0  ;;  %v775_v57 = vpop.f32.mrf.mxu1 }
 0x10e   : > { %v904_v55 = vld [vmem:[#allocation2 + $0x98] sm:$0xff]  ;;  %v1392_v59 = vpack.c.bf16 %v958_v49, %v958_v49  ;;  %v927_v61 = vadd.f32 %v1800_v2, %v888_v54  ;;  %855 = vst.msk [vmem:[#allocation2 + $0x28] sm:$0xff] %vm283_vm0, %v822_v51  ;;  %871 = vst.msk [vmem:[#allocation2 + $0xa8] sm:$0xff] %vm283_vm0, %v838_v52  ;;  %v326_v54 = vld [vmem:[#allocation2 + $0x50] sm:$0xff] }
 0x10f   : > { %v1408_v60 = vpack.c.bf16 %v974_v50, %v974_v50  ;;  %v943_v62 = vadd.f32 %v1800_v2, %v904_v55  ;;  %v714_v63 = vpop.f32.mrf.mxu0  ;;  %v778_v0 = vpop.f32.mrf.mxu1 }
 0x110   : > { %1119 = vst.msk [vmem:[%s1810_s6 + $0x8] sm:$0xf] %vm1116_vm4, %v1392_v59  ;;  %v959_v1 = vmax.f32 %v927_v61, 0.0  ;;  %v823_v4 = vadd.f32 %v714_v63, %v322_v53  ;;  %v839_v5 = vadd.f32 %v778_v0, %v338_v58  ;;  %v342_v59 = vld [vmem:[#allocation2 + $0xd0] sm:$0xff] }
 0x111   : > { %1135 = vst.msk [vmem:[%s1810_s6 + $0x48] sm:$0xf] %vm1116_vm4, %v1408_v60  ;;  %v975_v3 = vmax.f32 %v943_v62, 0.0  ;;  %v889_v7 = vld [vmem:[#allocation2 + $0x20] sm:$0xff]  ;;  %v716_v9 = vpop.f32.mrf.mxu0  ;;  %v780_v10 = vpop.f32.mrf.mxu1 }
 0x112   : > { %v905_v8 = vld [vmem:[#allocation2 + $0xa0] sm:$0xff]  ;;  %v1393_v12 = vpack.c.bf16 %v959_v1, %v959_v1  ;;  %v928_v14 = vadd.f32 %v1800_v2, %v889_v7  ;;  %856 = vst.msk [vmem:[#allocation2 + $0x30] sm:$0xff] %vm283_vm0, %v823_v4  ;;  %872 = vst.msk [vmem:[#allocation2 + $0xb0] sm:$0xff] %vm283_vm0, %v839_v5  ;;  %v327_v7 = vld [vmem:[#allocation2 + $0x58] sm:$0xff] }
 0x113   : > { %v1409_v13 = vpack.c.bf16 %v975_v3, %v975_v3  ;;  %v944_v15 = vadd.f32 %v1800_v2, %v905_v8  ;;  %v717_v16 = vpop.f32.mrf.mxu0  ;;  %v781_v17 = vpop.f32.mrf.mxu1 }
 0x114   : > { %1120 = vst.msk [vmem:[%s1810_s6 + $0xc] sm:$0xf] %vm1116_vm4, %v1393_v12  ;;  %v960_v18 = vmax.f32 %v928_v14, 0.0  ;;  %v824_v20 = vadd.f32 %v717_v16, %v323_v6  ;;  %v840_v21 = vadd.f32 %v781_v17, %v339_v11  ;;  %v343_v12 = vld [vmem:[#allocation2 + $0xd8] sm:$0xff] }
 0x115   : > { %1136 = vst.msk [vmem:[%s1810_s6 + $0x4c] sm:$0xf] %vm1116_vm4, %v1409_v13  ;;  %v976_v19 = vmax.f32 %v944_v15, 0.0  ;;  %v890_v23 = vld [vmem:[#allocation2 + $0x28] sm:$0xff]  ;;  %v719_v25 = vpop.f32.mrf.mxu0  ;;  %v783_v26 = vpop.f32.mrf.mxu1 }
 0x116   : > { %v906_v24 = vld [vmem:[#allocation2 + $0xa8] sm:$0xff]  ;;  %v1394_v28 = vpack.c.bf16 %v960_v18, %v960_v18  ;;  %v929_v30 = vadd.f32 %v1800_v2, %v890_v23  ;;  %857 = vst.msk [vmem:[#allocation2 + $0x38] sm:$0xff] %vm283_vm0, %v824_v20  ;;  %873 = vst.msk [vmem:[#allocation2 + $0xb8] sm:$0xff] %vm283_vm0, %v840_v21  ;;  %v328_v23 = vld [vmem:[#allocation2 + $0x60] sm:$0xff] }
 0x117   : > { %v1410_v29 = vpack.c.bf16 %v976_v19, %v976_v19  ;;  %v945_v31 = vadd.f32 %v1800_v2, %v906_v24  ;;  %v722_v32 = vpop.f32.mrf.mxu0  ;;  %v786_v33 = vpop.f32.mrf.mxu1 }
 0x118   : > { %1121 = vst.msk [vmem:[%s1810_s6 + $0x10] sm:$0xf] %vm1116_vm4, %v1394_v28  ;;  %v961_v34 = vmax.f32 %v929_v30, 0.0  ;;  %v825_v36 = vadd.f32 %v722_v32, %v324_v22  ;;  %v841_v37 = vadd.f32 %v786_v33, %v340_v27  ;;  %v344_v28 = vld [vmem:[#allocation2 + $0xe0] sm:$0xff] }
 0x119   : > { %1137 = vst.msk [vmem:[%s1810_s6 + $0x50] sm:$0xf] %vm1116_vm4, %v1410_v29  ;;  %v977_v35 = vmax.f32 %v945_v31, 0.0  ;;  %v891_v39 = vld [vmem:[#allocation2 + $0x30] sm:$0xff]  ;;  %v724_v41 = vpop.f32.mrf.mxu0  ;;  %v788_v42 = vpop.f32.mrf.mxu1 }
 0x11a   : > { %v907_v40 = vld [vmem:[#allocation2 + $0xb0] sm:$0xff]  ;;  %v1395_v44 = vpack.c.bf16 %v961_v34, %v961_v34  ;;  %v930_v46 = vadd.f32 %v1800_v2, %v891_v39  ;;  %858 = vst.msk [vmem:[#allocation2 + $0x40] sm:$0xff] %vm283_vm0, %v825_v36  ;;  %874 = vst.msk [vmem:[#allocation2 + $0xc0] sm:$0xff] %vm283_vm0, %v841_v37  ;;  %v329_v39 = vld [vmem:[#allocation2 + $0x68] sm:$0xff] }
 0x11b   : > { %v1411_v45 = vpack.c.bf16 %v977_v35, %v977_v35  ;;  %v946_v47 = vadd.f32 %v1800_v2, %v907_v40  ;;  %v725_v48 = vpop.f32.mrf.mxu0  ;;  %v789_v49 = vpop.f32.mrf.mxu1 }
 0x11c   : > { %1122 = vst.msk [vmem:[%s1810_s6 + $0x14] sm:$0xf] %vm1116_vm4, %v1395_v44  ;;  %v962_v50 = vmax.f32 %v930_v46, 0.0  ;;  %v826_v52 = vadd.f32 %v725_v48, %v325_v38  ;;  %v842_v53 = vadd.f32 %v789_v49, %v341_v43  ;;  %v345_v44 = vld [vmem:[#allocation2 + $0xe8] sm:$0xff] }
 0x11d   : > { %1138 = vst.msk [vmem:[%s1810_s6 + $0x54] sm:$0xf] %vm1116_vm4, %v1411_v45  ;;  %v978_v51 = vmax.f32 %v946_v47, 0.0  ;;  %v892_v55 = vld [vmem:[#allocation2 + $0x38] sm:$0xff]  ;;  %v727_v57 = vpop.f32.mrf.mxu0  ;;  %v791_v58 = vpop.f32.mrf.mxu1 }
 0x11e   : > { %v908_v56 = vld [vmem:[#allocation2 + $0xb8] sm:$0xff]  ;;  %v1396_v60 = vpack.c.bf16 %v962_v50, %v962_v50  ;;  %v931_v62 = vadd.f32 %v1800_v2, %v892_v55  ;;  %859 = vst.msk [vmem:[#allocation2 + $0x48] sm:$0xff] %vm283_vm0, %v826_v52  ;;  %875 = vst.msk [vmem:[#allocation2 + $0xc8] sm:$0xff] %vm283_vm0, %v842_v53  ;;  %v330_v55 = vld [vmem:[#allocation2 + $0x70] sm:$0xff] }
 0x11f   : > { %v1412_v61 = vpack.c.bf16 %v978_v51, %v978_v51  ;;  %v947_v63 = vadd.f32 %v1800_v2, %v908_v56  ;;  %v730_v0 = vpop.f32.mrf.mxu0  ;;  %v794_v1 = vpop.f32.mrf.mxu1 }
 0x120   : > { %1123 = vst.msk [vmem:[%s1810_s6 + $0x18] sm:$0xf] %vm1116_vm4, %v1396_v60  ;;  %v963_v3 = vmax.f32 %v931_v62, 0.0  ;;  %v827_v5 = vadd.f32 %v730_v0, %v326_v54  ;;  %v843_v6 = vadd.f32 %v794_v1, %v342_v59  ;;  %v346_v60 = vld [vmem:[#allocation2 + $0xf0] sm:$0xff] }
 0x121   : > { %1139 = vst.msk [vmem:[%s1810_s6 + $0x58] sm:$0xf] %vm1116_vm4, %v1412_v61  ;;  %v979_v4 = vmax.f32 %v947_v63, 0.0  ;;  %v893_v8 = vld [vmem:[#allocation2 + $0x40] sm:$0xff]  ;;  %v732_v10 = vpop.f32.mrf.mxu0  ;;  %v796_v11 = vpop.f32.mrf.mxu1 }
 0x122   : > { %v909_v9 = vld [vmem:[#allocation2 + $0xc0] sm:$0xff]  ;;  %v1397_v13 = vpack.c.bf16 %v963_v3, %v963_v3  ;;  %v932_v15 = vadd.f32 %v1800_v2, %v893_v8  ;;  %860 = vst.msk [vmem:[#allocation2 + $0x50] sm:$0xff] %vm283_vm0, %v827_v5  ;;  %876 = vst.msk [vmem:[#allocation2 + $0xd0] sm:$0xff] %vm283_vm0, %v843_v6  ;;  %v331_v8 = vld [vmem:[#allocation2 + $0x78] sm:$0xff] }
 0x123   : > { %v1413_v14 = vpack.c.bf16 %v979_v4, %v979_v4  ;;  %v948_v16 = vadd.f32 %v1800_v2, %v909_v9  ;;  %v733_v17 = vpop.f32.mrf.mxu0  ;;  %v797_v18 = vpop.f32.mrf.mxu1 }
 0x124   : > { %1124 = vst.msk [vmem:[%s1810_s6 + $0x1c] sm:$0xf] %vm1116_vm4, %v1397_v13  ;;  %v964_v19 = vmax.f32 %v932_v15, 0.0  ;;  %v828_v21 = vadd.f32 %v733_v17, %v327_v7  ;;  %v844_v22 = vadd.f32 %v797_v18, %v343_v12  ;;  %v347_v13 = vld [vmem:[#allocation2 + $0xf8] sm:$0xff] }
 0x125   : > { %1140 = vst.msk [vmem:[%s1810_s6 + $0x5c] sm:$0xf] %vm1116_vm4, %v1413_v14  ;;  %v980_v20 = vmax.f32 %v948_v16, 0.0  ;;  %v894_v24 = vld [vmem:[#allocation2 + $0x48] sm:$0xff]  ;;  %v735_v26 = vpop.f32.mrf.mxu0  ;;  %v799_v27 = vpop.f32.mrf.mxu1 }
 0x126   : > { %v910_v25 = vld [vmem:[#allocation2 + $0xc8] sm:$0xff]  ;;  %v1398_v29 = vpack.c.bf16 %v964_v19, %v964_v19  ;;  %v933_v31 = vadd.f32 %v1800_v2, %v894_v24  ;;  %861 = vst.msk [vmem:[#allocation2 + $0x58] sm:$0xff] %vm283_vm0, %v828_v21  ;;  %877 = vst.msk [vmem:[#allocation2 + $0xd8] sm:$0xff] %vm283_vm0, %v844_v22 }
 0x127   : > { %v1414_v30 = vpack.c.bf16 %v980_v20, %v980_v20  ;;  %v949_v32 = vadd.f32 %v1800_v2, %v910_v25  ;;  %v738_v33 = vpop.f32.mrf.mxu0  ;;  %v802_v34 = vpop.f32.mrf.mxu1 }
 0x128   : > { %1125 = vst.msk [vmem:[%s1810_s6 + $0x20] sm:$0xf] %vm1116_vm4, %v1398_v29  ;;  %v965_v35 = vmax.f32 %v933_v31, 0.0  ;;  %v829_v37 = vadd.f32 %v738_v33, %v328_v23  ;;  %v845_v38 = vadd.f32 %v802_v34, %v344_v28 }
 0x129   : > { %1141 = vst.msk [vmem:[%s1810_s6 + $0x60] sm:$0xf] %vm1116_vm4, %v1414_v30  ;;  %v981_v36 = vmax.f32 %v949_v32, 0.0  ;;  %v895_v40 = vld [vmem:[#allocation2 + $0x50] sm:$0xff]  ;;  %v740_v42 = vpop.f32.mrf.mxu0  ;;  %v804_v43 = vpop.f32.mrf.mxu1 }
 0x12a   : > { %v911_v41 = vld [vmem:[#allocation2 + $0xd0] sm:$0xff]  ;;  %v1399_v45 = vpack.c.bf16 %v965_v35, %v965_v35  ;;  %v934_v47 = vadd.f32 %v1800_v2, %v895_v40  ;;  %862 = vst.msk [vmem:[#allocation2 + $0x60] sm:$0xff] %vm283_vm0, %v829_v37  ;;  %878 = vst.msk [vmem:[#allocation2 + $0xe0] sm:$0xff] %vm283_vm0, %v845_v38 }
 0x12b   : > { %v1415_v46 = vpack.c.bf16 %v981_v36, %v981_v36  ;;  %v950_v48 = vadd.f32 %v1800_v2, %v911_v41  ;;  %v741_v49 = vpop.f32.mrf.mxu0  ;;  %v805_v50 = vpop.f32.mrf.mxu1 }
 0x12c   : > { %1126 = vst.msk [vmem:[%s1810_s6 + $0x24] sm:$0xf] %vm1116_vm4, %v1399_v45  ;;  %v966_v51 = vmax.f32 %v934_v47, 0.0  ;;  %v830_v53 = vadd.f32 %v741_v49, %v329_v39  ;;  %v846_v54 = vadd.f32 %v805_v50, %v345_v44 }
 0x12d   : > { %1142 = vst.msk [vmem:[%s1810_s6 + $0x64] sm:$0xf] %vm1116_vm4, %v1415_v46  ;;  %v982_v52 = vmax.f32 %v950_v48, 0.0  ;;  %v896_v56 = vld [vmem:[#allocation2 + $0x58] sm:$0xff]  ;;  %v743_v58 = vpop.f32.mrf.mxu0  ;;  %v807_v59 = vpop.f32.mrf.mxu1 }
 0x12e   : > { %v912_v57 = vld [vmem:[#allocation2 + $0xd8] sm:$0xff]  ;;  %v1400_v61 = vpack.c.bf16 %v966_v51, %v966_v51  ;;  %v935_v63 = vadd.f32 %v1800_v2, %v896_v56  ;;  %863 = vst.msk [vmem:[#allocation2 + $0x68] sm:$0xff] %vm283_vm0, %v830_v53  ;;  %879 = vst.msk [vmem:[#allocation2 + $0xe8] sm:$0xff] %vm283_vm0, %v846_v54 }
 0x12f   : > { %v1416_v62 = vpack.c.bf16 %v982_v52, %v982_v52  ;;  %v951_v0 = vadd.f32 %v1800_v2, %v912_v57  ;;  %v746_v1 = vpop.f32.mrf.mxu0  ;;  %v810_v3 = vpop.f32.mrf.mxu1 }
 0x130   : > { %1127 = vst.msk [vmem:[%s1810_s6 + $0x28] sm:$0xf] %vm1116_vm4, %v1400_v61  ;;  %v967_v4 = vmax.f32 %v935_v63, 0.0  ;;  %v831_v6 = vadd.f32 %v746_v1, %v330_v55  ;;  %v847_v7 = vadd.f32 %v810_v3, %v346_v60 }
 0x131   : > { %1143 = vst.msk [vmem:[%s1810_s6 + $0x68] sm:$0xf] %vm1116_vm4, %v1416_v62  ;;  %v983_v5 = vmax.f32 %v951_v0, 0.0  ;;  %v897_v9 = vld [vmem:[#allocation2 + $0x60] sm:$0xff]  ;;  %v748_v11 = vpop.f32.mrf.mxu0  ;;  %v812_v12 = vpop.f32.mrf.mxu1 }
 0x132   : > { %v913_v10 = vld [vmem:[#allocation2 + $0xe0] sm:$0xff]  ;;  %v1401_v14 = vpack.c.bf16 %v967_v4, %v967_v4  ;;  %v936_v16 = vadd.f32 %v1800_v2, %v897_v9  ;;  %864 = vst.msk [vmem:[#allocation2 + $0x70] sm:$0xff] %vm283_vm0, %v831_v6  ;;  %880 = vst.msk [vmem:[#allocation2 + $0xf0] sm:$0xff] %vm283_vm0, %v847_v7 }
 0x133   : > { %v1417_v15 = vpack.c.bf16 %v983_v5, %v983_v5  ;;  %v952_v17 = vadd.f32 %v1800_v2, %v913_v10  ;;  %v749_v18 = vpop.f32.mrf.mxu0  ;;  %v813_v19 = vpop.f32.mrf.mxu1 }
 0x134   : > { %1128 = vst.msk [vmem:[%s1810_s6 + $0x2c] sm:$0xf] %vm1116_vm4, %v1401_v14  ;;  %v968_v20 = vmax.f32 %v936_v16, 0.0  ;;  %v832_v22 = vadd.f32 %v749_v18, %v331_v8  ;;  %v848_v23 = vadd.f32 %v813_v19, %v347_v13 }
 0x135   : > { %1144 = vst.msk [vmem:[%s1810_s6 + $0x6c] sm:$0xf] %vm1116_vm4, %v1417_v15  ;;  %v984_v21 = vmax.f32 %v952_v17, 0.0  ;;  %v898_v24 = vld [vmem:[#allocation2 + $0x68] sm:$0xff]  ;;  %v751_v26 = vpop.f32.mrf.mxu0  ;;  %v815_v27 = vpop.f32.mrf.mxu1 }
 0x136   : > { %v914_v25 = vld [vmem:[#allocation2 + $0xe8] sm:$0xff]  ;;  %v1402_v28 = vpack.c.bf16 %v968_v20, %v968_v20  ;;  %v937_v30 = vadd.f32 %v1800_v2, %v898_v24  ;;  %865 = vst.msk [vmem:[#allocation2 + $0x78] sm:$0xff] %vm283_vm0, %v832_v22  ;;  %881 = vst.msk [vmem:[#allocation2 + $0xf8] sm:$0xff] %vm283_vm0, %v848_v23 }
 0x137   : > { %v1418_v29 = vpack.c.bf16 %v984_v21, %v984_v21  ;;  %v953_v31 = vadd.f32 %v1800_v2, %v914_v25 }
 0x138   : > { %1129 = vst.msk [vmem:[%s1810_s6 + $0x30] sm:$0xf] %vm1116_vm4, %v1402_v28  ;;  %v969_v32 = vmax.f32 %v937_v30, 0.0 }
 0x139   : > { %1145 = vst.msk [vmem:[%s1810_s6 + $0x70] sm:$0xf] %vm1116_vm4, %v1418_v29  ;;  %v985_v33 = vmax.f32 %v953_v31, 0.0  ;;  %v899_v34 = vld [vmem:[#allocation2 + $0x70] sm:$0xff] }
 0x13a   : > { %v915_v35 = vld [vmem:[#allocation2 + $0xf0] sm:$0xff]  ;;  %v1403_v36 = vpack.c.bf16 %v969_v32, %v969_v32  ;;  %v938_v38 = vadd.f32 %v1800_v2, %v899_v34 }
 0x13b   : > { %v1419_v37 = vpack.c.bf16 %v985_v33, %v985_v33  ;;  %v954_v39 = vadd.f32 %v1800_v2, %v915_v35 }
 0x13c   : > { %1130 = vst.msk [vmem:[%s1810_s6 + $0x34] sm:$0xf] %vm1116_vm4, %v1403_v36  ;;  %v970_v40 = vmax.f32 %v938_v38, 0.0 }
 0x13d   : > { %1146 = vst.msk [vmem:[%s1810_s6 + $0x74] sm:$0xf] %vm1116_vm4, %v1419_v37  ;;  %v986_v41 = vmax.f32 %v954_v39, 0.0  ;;  %v900_v42 = vld [vmem:[#allocation2 + $0x78] sm:$0xff] }
 0x13e   : > { %v916_v43 = vld [vmem:[#allocation2 + $0xf8] sm:$0xff]  ;;  %v1404_v44 = vpack.c.bf16 %v970_v40, %v970_v40  ;;  %v939_v46 = vadd.f32 %v1800_v2, %v900_v42 }
 0x13f   : > { %v1420_v45 = vpack.c.bf16 %v986_v41, %v986_v41  ;;  %v955_v47 = vadd.f32 %v1800_v2, %v916_v43 }
 0x140   : > { %1131 = vst.msk [vmem:[%s1810_s6 + $0x38] sm:$0xf] %vm1116_vm4, %v1404_v44  ;;  %v971_v48 = vmax.f32 %v939_v46, 0.0 }
 0x141   : > { %1147 = vst.msk [vmem:[%s1810_s6 + $0x78] sm:$0xf] %vm1116_vm4, %v1420_v45  ;;  %v987_v49 = vmax.f32 %v955_v47, 0.0 }
 0x142   : > { %v1405_v50 = vpack.c.bf16 %v971_v48, %v971_v48 }
 0x143   : > { %v1421_v51 = vpack.c.bf16 %v987_v49, %v987_v49 }
 0x144   : > { %1132 = vst.msk [vmem:[%s1810_s6 + $0x3c] sm:$0xf] %vm1116_vm4, %v1405_v50 }
 0x145   : > { %1148 = vst.msk [vmem:[%s1810_s6 + $0x7c] sm:$0xf] %vm1116_vm4, %v1421_v51 }
 0x146 PF: > { %s13_s16 = sadd.s32 1, %s1581_s16   ;;  %s1951_s12 = smov %s1573_s14 }
 0x147   : > { %p10_p7 = scmp.ge.s32.totalorder %s13_s16, 6   ;;  %s1952_s13 = smov %s1577_s15 }
 0x148   : > { %s1953_s14 = smov %s1956_s17  ;;  %s1954_s15 = smov %s1960_s18 }
 0x149   :  { %12 = sbr.rel (!%p10_p7) target bundleno = 3 (0x3), region = 73 }

</bundles_post_ra>
